<compile_context>
chip_gen: v7x
topology: tpu7x:2x2x1
jax: 0.10.0
libtpu: 0.0.40
codegen_flags: <defaults>
</compile_context>

<pallas_src>
import jax
import jax.numpy as jnp
from jax.experimental import pallas as pl
from jax.experimental.pallas import tpu as pltpu


# ----------------------------------------------------------------------------
# Path 1: zero-traffic aliased identity
# ----------------------------------------------------------------------------
def _identity_alias_kernel(x_ref, o_ref):
    # Output aliases the input HBM buffer; nothing to compute or move.
    del x_ref
    pltpu.touch(o_ref)  # keep a read/write dep so the aliased output materializes


def _identity_alias_call(x):
    return pl.pallas_call(
        _identity_alias_kernel,
        out_shape=jax.ShapeDtypeStruct(x.shape, x.dtype),
        in_specs=[pl.BlockSpec(memory_space=pl.ANY)],
        out_specs=pl.BlockSpec(memory_space=pl.ANY),
        input_output_aliases={0: 0},
    )(x)


def identity_forward(x):
    """Pallas identity: y = x with zero HBM round-trip (aliased output)."""
    if x.size == 0:
        return x
    try:
        return _identity_alias_call(x)
    except Exception:
        # Safety net: fall back to the explicit copy kernel if the aliased
        # no-op path is unavailable on this JAX/Mosaic version.
        return identity_forward_copy(x)


# ----------------------------------------------------------------------------
# Path 2: tuned explicit copy
# ----------------------------------------------------------------------------
def _identity_copy_kernel(x_ref, o_ref):
    o_ref[...] = x_ref[...]


# Widest lane-dense column counts to try (all multiples of 128).
_LANE_CANDIDATES = (4096, 2048, 1024, 512, 256, 128)


def _device_kind():
    try:
        return jax.devices()[0].device_kind.lower()
    except Exception:
        return ""


def _tile_budget_bytes(kind):
    # v5e: keep 4x double-buffers well under the 16 MiB scoped default.
    if "v5" in kind or "v4" in kind:
        return 2 * 1024 * 1024
    # v7x: 3.2 TB/s/TC -> bigger tiles amortize the ~0.35 us/step overhead.
    if "v7" in kind:
        return 8 * 1024 * 1024
    # v6e (and unknown): ~86% of roofline plateau at 4 MiB tiles.
    return 4 * 1024 * 1024


def _vmem_limit_bytes(tile_bytes):
    # 2 input + 2 output double-buffers, plus headroom for Mosaic scratch.
    return int(min(max(4 * tile_bytes + (8 << 20), 16 << 20), 64 << 20))


def identity_forward_copy(x):
    """Pallas identity as an explicit HBM->HBM copy (fresh output buffer)."""
    orig_shape = x.shape
    dtype = x.dtype
    n = x.size
    if n == 0:
        return x

    itemsize = jnp.dtype(dtype).itemsize
    kind = _device_kind()
    tile_budget = _tile_budget_bytes(kind)
    cost = pl.CostEstimate(
        flops=0, transcendentals=0, bytes_accessed=2 * n * itemsize
    )

    lanes = next((c for c in _LANE_CANDIDATES if n % c == 0), None)

    if lanes is None:
        # Ragged 1-D copy: no pad/concat/slice (2*n bytes of traffic total);
        # Pallas masks the last partial block.
        tile_elems = max(128, ((tile_budget // itemsize) // 128) * 128)
        if tile_elems >= n:
            tile_elems = n  # full-extent block, always layout-legal
        grid = (pl.cdiv(n, tile_elems),)
        tile_bytes = tile_elems * itemsize
        out_flat = pl.pallas_call(
            _identity_copy_kernel,
            out_shape=jax.ShapeDtypeStruct((n,), dtype),
            grid_spec=pltpu.PrefetchScalarGridSpec(
                num_scalar_prefetch=0,
                grid=grid,
                in_specs=[pl.BlockSpec((tile_elems,), lambda i: (i,))],
                out_specs=pl.BlockSpec((tile_elems,), lambda i: (i,)),
            ),
            compiler_params=pltpu.CompilerParams(
                dimension_semantics=("parallel",),
                vmem_limit_bytes=_vmem_limit_bytes(tile_bytes),
            ),
            cost_estimate=cost,
        )(x.reshape(-1))
        return out_flat.reshape(orig_shape)

    # Lane-dense 2-D copy.
    rows = n // lanes
    x2d = x.reshape(rows, lanes)
    row_bytes = lanes * itemsize

    max_rows = tile_budget // row_bytes
    if max_rows >= rows:
        tile_rows = rows  # full extent along rows: always layout-legal
    else:
        tile_rows = max(8, (max_rows // 8) * 8)
        if tile_rows >= 32:
            # multiple of 32 sublanes covers f32/bf16/int8 native packing
            tile_rows = (tile_rows // 32) * 32

    # v7x has 2 TensorCores: give the "parallel" axis at least 2 steps for
    # non-trivial arrays so both cores get work.
    num_steps = (rows + tile_rows - 1) // tile_rows
    if "v7" in kind and num_steps < 2 and n * itemsize > (1 << 20) and rows >= 16:
        tile_rows = max(8, (((rows + 1) // 2) // 8) * 8)

    tile_bytes = tile_rows * lanes * itemsize
    grid = (pl.cdiv(rows, tile_rows),)

    out2d = pl.pallas_call(
        _identity_copy_kernel,
        out_shape=jax.ShapeDtypeStruct((rows, lanes), dtype),
        grid_spec=pltpu.PrefetchScalarGridSpec(
            num_scalar_prefetch=0,
            grid=grid,
            in_specs=[pl.BlockSpec((tile_rows, lanes), lambda i: (i, 0))],
            out_specs=pl.BlockSpec((tile_rows, lanes), lambda i: (i, 0)),
        ),
        compiler_params=pltpu.CompilerParams(
            dimension_semantics=("parallel",),
            vmem_limit_bytes=_vmem_limit_bytes(tile_bytes),
        ),
        cost_estimate=cost,
    )(x2d)
    return out2d.reshape(orig_shape)


if __name__ == "__main__":
    key = jax.random.PRNGKey(0)
    # Small shape consistent with a 3D-ResNet style input: (N, C, D, H, W)
    x = jax.random.normal(key, (2, 4, 4, 8, 8), dtype=jnp.float32)

    # Primary path: zero-traffic aliased identity.
    y = jax.block_until_ready(identity_forward(x))
    assert y.shape == x.shape, (y.shape, x.shape)
    assert y.dtype == x.dtype, (y.dtype, x.dtype)
    assert bool(jnp.array_equal(y, x)), "aliased identity output mismatch"

    # Explicit copy path (lane-dense 2-D tiling).
    y2 = jax.block_until_ready(identity_forward_copy(x))
    assert y2.shape == x.shape and y2.dtype == x.dtype
    assert bool(jnp.array_equal(y2, x)), "copy identity output mismatch"

    # Ragged (element count not a multiple of 128) copy path.
    x_odd = jax.random.normal(jax.random.PRNGKey(0), (3, 5, 7), dtype=jnp.float32)
    y3 = jax.block_until_ready(identity_forward_copy(x_odd))
    assert y3.shape == x_odd.shape and y3.dtype == x_odd.dtype
    assert bool(jnp.array_equal(y3, x_odd)), "ragged identity output mismatch"

    print("KERNEL_OK")
</pallas_src>

<mosaic_0001>
module attributes {stable_mosaic.version = 11 : i64} {
  func.func @_identity_alias_kernel(%arg0: memref<2x4x4x8x8xf32, #tpu.memory_space<any>>, %arg1: memref<2x4x4x8x8xf32, #tpu.memory_space<any>>) attributes {dimension_semantics = [], scalar_prefetch = 0 : i64, scratch_operands = 0 : i64, tpu.core_type = #tpu.core_type<tc>} {
    return
  }
}

module attributes {stable_mosaic.version = 11 : i64} {
  func.func @_identity_copy_kernel(%arg0: i32, %arg1: memref<1x2048xf32, #tpu.memory_space<vmem>>, %arg2: memref<1x2048xf32, #tpu.memory_space<vmem>>) attributes {dimension_semantics = [#tpu.dimension_semantics<parallel>], iteration_bounds = array<i64: 1>, scalar_prefetch = 0 : i64, scratch_operands = 0 : i64, tpu.core_type = #tpu.core_type<tc>, window_params = [{transform_indices = @transform_0, window_bounds = array<i64: 1, 2048>}, {transform_indices = @transform_1, window_bounds = array<i64: 1, 2048>}]} {
    %c0 = arith.constant 0 : index
    %c0_0 = arith.constant 0 : index
    %0 = vector.load %arg1[%c0, %c0_0] : memref<1x2048xf32, #tpu.memory_space<vmem>>, vector<1x2048xf32>
    %c0_1 = arith.constant 0 : index
    %c0_2 = arith.constant 0 : index
    %1 = vector.load %arg2[%c0_1, %c0_2] : memref<1x2048xf32, #tpu.memory_space<vmem>>, vector<1x2048xf32>
    tpu.vector_store %arg2[%c0_1, %c0_2], %0 {strides = array<i32>} : memref<1x2048xf32, #tpu.memory_space<vmem>>, vector<1x2048xf32>,
    return
  }
  func.func @transform_0(%arg0: i32) -> (i32, i32) {
    %c0_i32 = arith.constant 0 : i32
    %c0_i32_0 = arith.constant 0 : i32
    return %arg0, %c0_i32 : i32, i32
  }
  func.func @transform_1(%arg0: i32) -> (i32, i32) {
    %c0_i32 = arith.constant 0 : i32
    %c0_i32_0 = arith.constant 0 : i32
    return %arg0, %c0_i32 : i32, i32
  }
}

</mosaic_0001>

<bundles_post_ra>
// kernel: tpu_custom_call.1
= control target key start
LH: loop header
LB: loop body
LE: loop exit
PB: predicated region body
PF: predicated region fallthrough
CT: control target
= control target key end

     0   :  { %s16_s0 = inlined_call_operand.hbm [shape: f32[2,4,4,8,8], index: 0, kind: input, shape index: {}, may-alias: {0,1}]   ;;  %s17_s1 = inlined_call_operand.hbm [shape: f32[2,4,4,8,8], index: 1, kind: output, shape index: {}, may-alias: {0,1}]  }

// kernel: tpu_custom_call.1
= control target key start
LH: loop header
LB: loop body
LE: loop exit
PB: predicated region body
PF: predicated region fallthrough
CT: control target
= control target key end

     0   :  { %6 = vsyncpa [#allocation3], 0  ;;  %s126_s0 = inlined_call_operand.hbm [shape: f32[1,2048], index: 0, kind: input, shape index: {}]   ;;  %s127_s1 = inlined_call_operand.hbm [shape: f32[1,2048], index: 1, kind: output, shape index: {}]  }
   0x1   :  { %7 = vsyncpa [#allocation4], 0  ;;  %s90_s6 = smov [#allocation2]   ;;  %s42_s10 = scalar_lea.hbm %s126_s0, 256 }
   0x2   :  { %s14_s7 = sshll.u32 %s90_s6, 4  ;;  %p43_p0 = scmp.ne.s32.totalorder %s126_s0, %s42_s10  ;;  %s15_s7 = int_to_ptr.vmem [resolvable:$true] %s14_s7 }
   0x3   :  { %p46_p1 = scmp.lt.u32.totalorder %s42_s10, %s126_s0 }
   0x5   :  { %p48_p2 = pnand %p46_p1, %p43_p0 }
   0x7   :  { %51 = shalt.err (!%p48_p2)
}
   0x8   :  { %s52_s15 = scalar_lea.vmem %s15_s7, 256  ;;  %p57_p4 = scmp.lt.s32.totalorder %s15_s7, %s15_s7 }
   0x9   :  { %p53_p3 = scmp.ne.s32.totalorder %s15_s7, %s52_s15  ;;  %p58_p5 = scmp.lt.s32.totalorder %s52_s15, %s52_s15 }
   0xb   :  { %p59_p6 = por %p58_p5, %p57_p4 }
   0xd   :  { %p60_p7 = pnand %p59_p6, %p53_p3 }
   0xf   :  { %63 = shalt.err (!%p60_p7)
}
  0x10   :  { %17 = dma.hbm_to_vmem [thread:$0]  %s126_s0, 256, %s15_s7, [#allocation3]  }
  0x11   :  { %86 = dma.done.wait [#allocation3], 256  }
  0x12   :  { %87 = vsyncadd [#allocation3], 4294967040  ;;  %s91_s18 = smov [#allocation5]   ;;  %v21_v0 = vld [vmem:[#allocation2] sm:$0xff]  ;;  %v22_v1 = vld [vmem:[#allocation2 + $0x8] sm:$0xff] }
  0x13   :  { %s31_s19 = sshll.u32 %s91_s18, 4  ;;  %23 = vst [vmem:[#allocation5] sm:$0xff] %v21_v0  ;;  %24 = vst [vmem:[#allocation5 + $0x8] sm:$0xff] %v22_v1  ;;  %s32_s19 = int_to_ptr.vmem [resolvable:$true] %s31_s19 }
  0x14   :  { %s64_s20 = scalar_lea.vmem %s32_s19, 256  ;;  %p69_p9 = scmp.lt.s32.totalorder %s32_s19, %s32_s19 }
  0x15   :  { %p65_p8 = scmp.ne.s32.totalorder %s32_s19, %s64_s20  ;;  %p70_p10 = scmp.lt.s32.totalorder %s64_s20, %s64_s20 }
  0x17   :  { %p71_p11 = por %p70_p10, %p69_p9 }
  0x19   :  { %p72_p12 = pnand %p71_p11, %p65_p8 }
  0x1b   :  { %75 = shalt.err (!%p72_p12)
}
  0x1c   :  { %s76_s0 = scalar_lea.hbm %s127_s1, 256 }
  0x1d   :  { %p77_p13 = scmp.ne.s32.totalorder %s127_s1, %s76_s0  ;;  %p80_p0 = scmp.lt.u32.totalorder %s76_s0, %s127_s1 }
  0x1f   :  { %p82_p1 = pnand %p80_p0, %p77_p13 }
  0x21   :  { %85 = shalt.err (!%p82_p1)
}
  0x22   :  { %34 = dma.vmem_to_hbm [thread:$0]  %s32_s19, 256, %s127_s1, [#allocation4]  }
  0x23   :  { %88 = dma.done.wait [#allocation4], 256  }
  0x24   :  { %89 = vsyncadd [#allocation4], 4294967040 }
  0x25   :  { %38 = vsyncpa [#allocation3], 1 }
  0x26   :  { %39 = vsyncpa [#allocation4], 1 }

</bundles_post_ra>
